<compile_context>
chip_gen: v7x
topology: tpu7x:2x2x1
jax: 0.10.0
libtpu: 0.0.40
codegen_flags: <defaults>
</compile_context>

<pallas_src>
import functools

import jax
import jax.numpy as jnp
from jax.experimental import pallas as pl
from jax.experimental.pallas import tpu as pltpu

# --- model hyperparameters (match the module's hard-coded constants) ---
m = 2          # embedding dim
n_step = 2     # context length
n_hidden = 2   # hidden size
n_class = 8    # vocab size (len(word_dict) in the original; synthetic here)

# --- padded / packed layout constants ---
NHP = 128                      # padded hidden dim (lanes)
NCP = 128                      # padded class dim == output lane width
K_OH = 128                     # combined one-hot width (>= n_step * n_class)
PACK = NCP // n_class          # batch rows packed per 128-lane output row (=16)
ALIGN = 8 * PACK               # batch-tile alignment so packed out blocks are (8,128)

assert NCP % n_class == 0 and n_step * n_class <= K_OH


def _round_up(x, k):
    return ((x + k - 1) // k) * k


def _small_mm(a, b):
    """Exact f32 matmul for tiny packing-time shapes (pure VPU math, no MXU rounding)."""
    return (a[:, :, None] * b[None, :, :]).sum(axis=1)


def pack_nnlm_params(C, H, d, W, U, b):
    """One-time parameter fusion (hoisted out of the forward pass).

    G[s*n_class + c, :NHP]  = C[c] @ H[s*m:(s+1)*m]  (+ d for s == 0)
    G[s*n_class + c, NHP:]  = C[c] @ W[s*m:(s+1)*m]  (+ b for s == 0)
    Each combined one-hot row has exactly one hit per position block, so
    onehot(x) @ G == [d + x_emb@H | b + x_emb@W] exactly.
    """
    C = jnp.asarray(C, jnp.float32)
    H = jnp.asarray(H, jnp.float32)
    W = jnp.asarray(W, jnp.float32)
    d = jnp.asarray(d, jnp.float32)
    U = jnp.asarray(U, jnp.float32)
    b = jnp.asarray(b, jnp.float32)

    G = jnp.zeros((K_OH, NHP + NCP), jnp.float32)
    for s in range(n_step):
        gh = _small_mm(C, H[s * m:(s + 1) * m, :])          # [n_class, n_hidden]
        gw = _small_mm(C, W[s * m:(s + 1) * m, :])          # [n_class, n_class]
        G = G.at[s * n_class:(s + 1) * n_class, :n_hidden].add(gh)
        G = G.at[s * n_class:(s + 1) * n_class, NHP:NHP + n_class].add(gw)
    # Fold biases into the position-0 block (hit exactly once per batch row).
    G = G.at[:n_class, :n_hidden].add(d)
    G = G.at[:n_class, NHP:NHP + n_class].add(b)

    U_pad = jnp.zeros((NHP, NCP), jnp.float32).at[:n_hidden, :n_class].set(U)
    return G, U_pad


def _nnlm_kernel(idx_ref, g_ref, u_ref, out_ref):
    """One batch tile: combined one-hot -> fused [d+xH | b+xW] matmul -> tanh -> @U.

    idx_ref : [TB, n_step]        int32 token ids
    g_ref   : [K_OH, NHP+NCP]     fused (gather+H|W+biases) weights, VMEM-resident
    u_ref   : [NHP, NCP]          padded U, VMEM-resident
    out_ref : [TB//PACK, NCP]     packed logits (PACK batch rows per lane-dense row)
    """
    idx = idx_ref[...]                                              # [TB, n_step] i32
    lane = jax.lax.broadcasted_iota(jnp.int32, (1, K_OH), 1)        # [1, 128]

    # Single combined one-hot: position s ids offset by s*n_class, OR'd together.
    oh = idx[:, 0:1] == lane
    for s in range(1, n_step):
        oh = jnp.logical_or(oh, (idx[:, s:s + 1] + s * n_class) == lane)
    onehot = oh.astype(jnp.float32)                                 # [TB, 128]

    # One well-shaped MXU push; biases already folded into G.
    hw = jnp.dot(onehot, g_ref[...], preferred_element_type=jnp.float32)  # [TB, NHP+NCP]
    h = jnp.tanh(hw[:, :NHP])                                       # = tanh(d + x@H)
    out = hw[:, NHP:] + jnp.dot(h, u_ref[...], preferred_element_type=jnp.float32)

    # Pack PACK(=16) batch rows' n_class logits into each 128-lane output row:
    # out_ref[r, j*n_class:(j+1)*n_class] holds tile-local batch row j*TBd + r.
    tbd = out_ref.shape[0]
    for j in range(PACK):
        out_ref[:, j * n_class:(j + 1) * n_class] = (
            out[j * tbd:(j + 1) * tbd, :n_class].astype(out_ref.dtype))


@functools.partial(jax.jit, static_argnames=("tb",))
def nnlm_forward(idx, packed_params, *, tb=1024):
    """idx: [B, n_step] int token ids. Returns logits [B, n_class] (f32)."""
    G, U_pad = packed_params
    B = idx.shape[0]

    # Batch tiling: ALIGN(=128)-aligned tiles, capped at `tb`, and chosen so the
    # grid has >= 2 steps whenever possible (v7x: both TensorCores get work).
    B_a = _round_up(B, ALIGN)
    if B_a >= 2 * ALIGN:
        TB = min(_round_up(tb, ALIGN), _round_up((B_a + 1) // 2, ALIGN))
    else:
        TB = B_a
    B_pad = _round_up(B, TB)
    n_tiles = B_pad // TB
    TBd = TB // PACK                                   # packed-output rows per tile

    idx_pad = jnp.zeros((B_pad, n_step), jnp.int32).at[:B].set(idx.astype(jnp.int32))

    out = pl.pallas_call(
        _nnlm_kernel,
        out_shape=jax.ShapeDtypeStruct((B_pad // PACK, NCP), jnp.float32),
        grid=(n_tiles,),
        in_specs=[
            pl.BlockSpec((TB, n_step), lambda i: (i, 0)),          # token ids (streamed)
            pl.BlockSpec((K_OH, NHP + NCP), lambda i: (0, 0)),     # fused G (resident)
            pl.BlockSpec((NHP, NCP), lambda i: (0, 0)),            # U (resident)
        ],
        out_specs=pl.BlockSpec((TBd, NCP), lambda i: (i, 0)),      # packed, lane-dense
        compiler_params=pltpu.CompilerParams(
            dimension_semantics=("parallel",)),                    # v7x: 2 TCs split batch
    )(idx_pad, G, U_pad)

    # Un-pack (touches only B_pad * n_class * 4 bytes): HBM row i*TBd + r,
    # lanes [j*n_class, (j+1)*n_class) hold batch row i*TB + j*TBd + r.
    logits = (out.reshape(n_tiles, TBd, PACK, n_class)
                 .transpose(0, 2, 1, 3)
                 .reshape(B_pad, n_class))
    return logits[:B]


def nnlm_reference(idx, C, H, d, W, U, b):
    x = jnp.take(C, idx, axis=0).reshape(idx.shape[0], n_step * m)
    h = jnp.tanh(d + x @ H)
    return b + x @ W + h @ U


if __name__ == "__main__":
    key = jax.random.PRNGKey(0)
    k_idx, k_C, k_H, k_W, k_d, k_U, k_b = jax.random.split(key, 7)

    batch = 256
    idx = jax.random.randint(k_idx, (batch, n_step), 0, n_class, dtype=jnp.int32)

    # Deterministic parameter init (matches nn.Embedding / torch.randn shapes).
    C = jax.random.normal(k_C, (n_class, m), dtype=jnp.float32)
    H = jax.random.normal(k_H, (n_step * m, n_hidden), dtype=jnp.float32)
    W = jax.random.normal(k_W, (n_step * m, n_class), dtype=jnp.float32)
    d = jax.random.normal(k_d, (n_hidden,), dtype=jnp.float32)
    U = jax.random.normal(k_U, (n_hidden, n_class), dtype=jnp.float32)
    b = jax.random.normal(k_b, (n_class,), dtype=jnp.float32)

    # One-time parameter packing, hoisted out of the forward pass.
    packed = pack_nnlm_params(C, H, d, W, U, b)
    packed = jax.block_until_ready(packed)

    # tb=128 -> two 128-row tiles for batch=256 (exercises the batch grid and the
    # v7x dual-TensorCore split); production default is tb=1024.
    out = nnlm_forward(idx, packed, tb=128)
    out = jax.block_until_ready(out)

    ref = nnlm_reference(idx, C, H, d, W, U, b)
    assert out.shape == (batch, n_class)
    assert jnp.allclose(out, ref, atol=1e-3, rtol=1e-3), "mismatch vs reference"

    print("KERNEL_OK")
</pallas_src>

<mosaic_0001>
module attributes {stable_mosaic.version = 11 : i64} {
  func.func @_nnlm_kernel(%arg0: i32, %arg1: memref<128x2xi32, #tpu.memory_space<vmem>>, %arg2: memref<128x256xf32, #tpu.memory_space<vmem>>, %arg3: memref<128x128xf32, #tpu.memory_space<vmem>>, %arg4: memref<8x128xf32, #tpu.memory_space<vmem>>) attributes {dimension_semantics = [#tpu.dimension_semantics<parallel>], iteration_bounds = array<i64: 2>, scalar_prefetch = 0 : i64, scratch_operands = 0 : i64, tpu.core_type = #tpu.core_type<tc>, window_params = [{transform_indices = @transform_0, window_bounds = array<i64: 128, 2>}, {pipeline_mode = #tpu.pipeline_mode<synchronous>, transform_indices = @transform_1, window_bounds = array<i64: 128, 256>}, {pipeline_mode = #tpu.pipeline_mode<synchronous>, transform_indices = @transform_2, window_bounds = array<i64: 128, 128>}, {transform_indices = @transform_3, window_bounds = array<i64: 8, 128>}]} {
    %c0 = arith.constant 0 : index
    %c0_0 = arith.constant 0 : index
    %0 = vector.load %arg1[%c0, %c0_0] : memref<128x2xi32, #tpu.memory_space<vmem>>, vector<128x2xi32>
    %1 = tpu.iota {dimensions = array<i32: 1>} : vector<1x128xi32>
    %2 = vector.extract_strided_slice %0 {offsets = [0, 0], sizes = [128, 1], strides = [1, 1]} : vector<128x2xi32> to vector<128x1xi32>
    %3 = vector.broadcast %2 : vector<128x1xi32> to vector<128x128xi32>
    %4 = vector.broadcast %1 : vector<1x128xi32> to vector<128x128xi32>
    %5 = arith.cmpi eq, %3, %4 : vector<128x128xi32>
    %6 = vector.extract_strided_slice %0 {offsets = [0, 1], sizes = [128, 1], strides = [1, 1]} : vector<128x2xi32> to vector<128x1xi32>
    %c8_i32 = arith.constant 8 : i32
    %7 = vector.broadcast %c8_i32 : i32 to vector<128x1xi32>
    %8 = arith.addi %6, %7 : vector<128x1xi32>
    %9 = vector.broadcast %8 : vector<128x1xi32> to vector<128x128xi32>
    %10 = vector.broadcast %1 : vector<1x128xi32> to vector<128x128xi32>
    %11 = arith.cmpi eq, %9, %10 : vector<128x128xi32>
    %12 = arith.ori %5, %11 : vector<128x128xi1>
    %13 = arith.extui %12 : vector<128x128xi1> to vector<128x128xi32>
    %14 = arith.sitofp %13 : vector<128x128xi32> to vector<128x128xf32>
    %c0_1 = arith.constant 0 : index
    %c0_2 = arith.constant 0 : index
    %15 = vector.load %arg2[%c0_1, %c0_2] : memref<128x256xf32, #tpu.memory_space<vmem>>, vector<128x256xf32>
    %cst = arith.constant dense<0.000000e+00> : vector<128x256xf32>
    %16 = tpu.matmul %14, %15, %cst {dimension_numbers = #tpu.dot_dimension_numbers<[1], [0], [0], [1], [0, 0, 1, 1], [], []>} : vector<128x128xf32>, vector<128x256xf32>, vector<128x256xf32> -> vector<128x256xf32>
    %17 = vector.extract_strided_slice %16 {offsets = [0, 0], sizes = [128, 128], strides = [1, 1]} : vector<128x256xf32> to vector<128x128xf32>
    %18 = math.tanh %17 : vector<128x128xf32>
    %19 = vector.extract_strided_slice %16 {offsets = [0, 128], sizes = [128, 128], strides = [1, 1]} : vector<128x256xf32> to vector<128x128xf32>
    %c0_3 = arith.constant 0 : index
    %c0_4 = arith.constant 0 : index
    %20 = vector.load %arg3[%c0_3, %c0_4] : memref<128x128xf32, #tpu.memory_space<vmem>>, vector<128x128xf32>
    %cst_5 = arith.constant dense<0.000000e+00> : vector<128x128xf32>
    %21 = tpu.matmul %18, %20, %cst_5 {dimension_numbers = #tpu.dot_dimension_numbers<[1], [0], [0], [1], [0, 0, 1, 1], [], []>} : vector<128x128xf32>, vector<128x128xf32>, vector<128x128xf32> -> vector<128x128xf32>
    %22 = arith.addf %19, %21 : vector<128x128xf32>
    %23 = vector.extract_strided_slice %22 {offsets = [0, 0], sizes = [8, 8], strides = [1, 1]} : vector<128x128xf32> to vector<8x8xf32>
    %c0_6 = arith.constant 0 : index
    %c0_7 = arith.constant 0 : index
    %24 = vector.load %arg4[%c0_6, %c0_7] : memref<8x128xf32, #tpu.memory_space<vmem>>, vector<8x8xf32>
    tpu.vector_store %arg4[%c0_6, %c0_7], %23 {strides = array<i32>} : memref<8x128xf32, #tpu.memory_space<vmem>>, vector<8x8xf32>,
    %25 = vector.extract_strided_slice %22 {offsets = [8, 0], sizes = [8, 8], strides = [1, 1]} : vector<128x128xf32> to vector<8x8xf32>
    %c0_8 = arith.constant 0 : index
    %c8 = arith.constant 8 : index
    %26 = vector.load %arg4[%c0_8, %c8] : memref<8x128xf32, #tpu.memory_space<vmem>>, vector<8x8xf32>
    tpu.vector_store %arg4[%c0_8, %c8], %25 {strides = array<i32>} : memref<8x128xf32, #tpu.memory_space<vmem>>, vector<8x8xf32>,
    %27 = vector.extract_strided_slice %22 {offsets = [16, 0], sizes = [8, 8], strides = [1, 1]} : vector<128x128xf32> to vector<8x8xf32>
    %c0_9 = arith.constant 0 : index
    %c16 = arith.constant 16 : index
    %28 = vector.load %arg4[%c0_9, %c16] : memref<8x128xf32, #tpu.memory_space<vmem>>, vector<8x8xf32>
    tpu.vector_store %arg4[%c0_9, %c16], %27 {strides = array<i32>} : memref<8x128xf32, #tpu.memory_space<vmem>>, vector<8x8xf32>,
    %29 = vector.extract_strided_slice %22 {offsets = [24, 0], sizes = [8, 8], strides = [1, 1]} : vector<128x128xf32> to vector<8x8xf32>
    %c0_10 = arith.constant 0 : index
    %c24 = arith.constant 24 : index
    %30 = vector.load %arg4[%c0_10, %c24] : memref<8x128xf32, #tpu.memory_space<vmem>>, vector<8x8xf32>
    tpu.vector_store %arg4[%c0_10, %c24], %29 {strides = array<i32>} : memref<8x128xf32, #tpu.memory_space<vmem>>, vector<8x8xf32>,
    %31 = vector.extract_strided_slice %22 {offsets = [32, 0], sizes = [8, 8], strides = [1, 1]} : vector<128x128xf32> to vector<8x8xf32>
    %c0_11 = arith.constant 0 : index
    %c32 = arith.constant 32 : index
    %32 = vector.load %arg4[%c0_11, %c32] : memref<8x128xf32, #tpu.memory_space<vmem>>, vector<8x8xf32>
    tpu.vector_store %arg4[%c0_11, %c32], %31 {strides = array<i32>} : memref<8x128xf32, #tpu.memory_space<vmem>>, vector<8x8xf32>,
    %33 = vector.extract_strided_slice %22 {offsets = [40, 0], sizes = [8, 8], strides = [1, 1]} : vector<128x128xf32> to vector<8x8xf32>
    %c0_12 = arith.constant 0 : index
    %c40 = arith.constant 40 : index
    %34 = vector.load %arg4[%c0_12, %c40] : memref<8x128xf32, #tpu.memory_space<vmem>>, vector<8x8xf32>
    tpu.vector_store %arg4[%c0_12, %c40], %33 {strides = array<i32>} : memref<8x128xf32, #tpu.memory_space<vmem>>, vector<8x8xf32>,
    %35 = vector.extract_strided_slice %22 {offsets = [48, 0], sizes = [8, 8], strides = [1, 1]} : vector<128x128xf32> to vector<8x8xf32>
    %c0_13 = arith.constant 0 : index
    %c48 = arith.constant 48 : index
    %36 = vector.load %arg4[%c0_13, %c48] : memref<8x128xf32, #tpu.memory_space<vmem>>, vector<8x8xf32>
    tpu.vector_store %arg4[%c0_13, %c48], %35 {strides = array<i32>} : memref<8x128xf32, #tpu.memory_space<vmem>>, vector<8x8xf32>,
    %37 = vector.extract_strided_slice %22 {offsets = [56, 0], sizes = [8, 8], strides = [1, 1]} : vector<128x128xf32> to vector<8x8xf32>
    %c0_14 = arith.constant 0 : index
    %c56 = arith.constant 56 : index
    %38 = vector.load %arg4[%c0_14, %c56] : memref<8x128xf32, #tpu.memory_space<vmem>>, vector<8x8xf32>
    tpu.vector_store %arg4[%c0_14, %c56], %37 {strides = array<i32>} : memref<8x128xf32, #tpu.memory_space<vmem>>, vector<8x8xf32>,
    %39 = vector.extract_strided_slice %22 {offsets = [64, 0], sizes = [8, 8], strides = [1, 1]} : vector<128x128xf32> to vector<8x8xf32>
    %c0_15 = arith.constant 0 : index
    %c64 = arith.constant 64 : index
    %40 = vector.load %arg4[%c0_15, %c64] : memref<8x128xf32, #tpu.memory_space<vmem>>, vector<8x8xf32>
    tpu.vector_store %arg4[%c0_15, %c64], %39 {strides = array<i32>} : memref<8x128xf32, #tpu.memory_space<vmem>>, vector<8x8xf32>,
    %41 = vector.extract_strided_slice %22 {offsets = [72, 0], sizes = [8, 8], strides = [1, 1]} : vector<128x128xf32> to vector<8x8xf32>
    %c0_16 = arith.constant 0 : index
    %c72 = arith.constant 72 : index
    %42 = vector.load %arg4[%c0_16, %c72] : memref<8x128xf32, #tpu.memory_space<vmem>>, vector<8x8xf32>
    tpu.vector_store %arg4[%c0_16, %c72], %41 {strides = array<i32>} : memref<8x128xf32, #tpu.memory_space<vmem>>, vector<8x8xf32>,
    %43 = vector.extract_strided_slice %22 {offsets = [80, 0], sizes = [8, 8], strides = [1, 1]} : vector<128x128xf32> to vector<8x8xf32>
    %c0_17 = arith.constant 0 : index
    %c80 = arith.constant 80 : index
    %44 = vector.load %arg4[%c0_17, %c80] : memref<8x128xf32, #tpu.memory_space<vmem>>, vector<8x8xf32>
    tpu.vector_store %arg4[%c0_17, %c80], %43 {strides = array<i32>} : memref<8x128xf32, #tpu.memory_space<vmem>>, vector<8x8xf32>,
    %45 = vector.extract_strided_slice %22 {offsets = [88, 0], sizes = [8, 8], strides = [1, 1]} : vector<128x128xf32> to vector<8x8xf32>
    %c0_18 = arith.constant 0 : index
    %c88 = arith.constant 88 : index
    %46 = vector.load %arg4[%c0_18, %c88] : memref<8x128xf32, #tpu.memory_space<vmem>>, vector<8x8xf32>
    tpu.vector_store %arg4[%c0_18, %c88], %45 {strides = array<i32>} : memref<8x128xf32, #tpu.memory_space<vmem>>, vector<8x8xf32>,
    %47 = vector.extract_strided_slice %22 {offsets = [96, 0], sizes = [8, 8], strides = [1, 1]} : vector<128x128xf32> to vector<8x8xf32>
    %c0_19 = arith.constant 0 : index
    %c96 = arith.constant 96 : index
    %48 = vector.load %arg4[%c0_19, %c96] : memref<8x128xf32, #tpu.memory_space<vmem>>, vector<8x8xf32>
    tpu.vector_store %arg4[%c0_19, %c96], %47 {strides = array<i32>} : memref<8x128xf32, #tpu.memory_space<vmem>>, vector<8x8xf32>,
    %49 = vector.extract_strided_slice %22 {offsets = [104, 0], sizes = [8, 8], strides = [1, 1]} : vector<128x128xf32> to vector<8x8xf32>
    %c0_20 = arith.constant 0 : index
    %c104 = arith.constant 104 : index
    %50 = vector.load %arg4[%c0_20, %c104] : memref<8x128xf32, #tpu.memory_space<vmem>>, vector<8x8xf32>
    tpu.vector_store %arg4[%c0_20, %c104], %49 {strides = array<i32>} : memref<8x128xf32, #tpu.memory_space<vmem>>, vector<8x8xf32>,
    %51 = vector.extract_strided_slice %22 {offsets = [112, 0], sizes = [8, 8], strides = [1, 1]} : vector<128x128xf32> to vector<8x8xf32>
    %c0_21 = arith.constant 0 : index
    %c112 = arith.constant 112 : index
    %52 = vector.load %arg4[%c0_21, %c112] : memref<8x128xf32, #tpu.memory_space<vmem>>, vector<8x8xf32>
    tpu.vector_store %arg4[%c0_21, %c112], %51 {strides = array<i32>} : memref<8x128xf32, #tpu.memory_space<vmem>>, vector<8x8xf32>,
    %53 = vector.extract_strided_slice %22 {offsets = [120, 0], sizes = [8, 8], strides = [1, 1]} : vector<128x128xf32> to vector<8x8xf32>
    %c0_22 = arith.constant 0 : index
    %c120 = arith.constant 120 : index
    %54 = vector.load %arg4[%c0_22, %c120] : memref<8x128xf32, #tpu.memory_space<vmem>>, vector<8x8xf32>
    tpu.vector_store %arg4[%c0_22, %c120], %53 {strides = array<i32>} : memref<8x128xf32, #tpu.memory_space<vmem>>, vector<8x8xf32>,
    return
  }
  func.func @transform_0(%arg0: i32) -> (i32, i32) {
    %c0_i32 = arith.constant 0 : i32
    %c0_i32_0 = arith.constant 0 : i32
    return %arg0, %c0_i32 : i32, i32
  }
  func.func @transform_1(%arg0: i32) -> (i32, i32) {
    %c0_i32 = arith.constant 0 : i32
    %c0_i32_0 = arith.constant 0 : i32
    %c0_i32_1 = arith.constant 0 : i32
    return %c0_i32, %c0_i32_0 : i32, i32
  }
  func.func @transform_2(%arg0: i32) -> (i32, i32) {
    %c0_i32 = arith.constant 0 : i32
    %c0_i32_0 = arith.constant 0 : i32
    %c0_i32_1 = arith.constant 0 : i32
    return %c0_i32, %c0_i32_0 : i32, i32
  }
  func.func @transform_3(%arg0: i32) -> (i32, i32) {
    %c0_i32 = arith.constant 0 : i32
    %c0_i32_0 = arith.constant 0 : i32
    return %arg0, %c0_i32 : i32, i32
  }
}

</mosaic_0001>

<bundles_post_ra>
// kernel: nnlm_forward.1
= control target key start
LH: loop header
LB: loop body
LE: loop exit
PB: predicated region body
PF: predicated region fallthrough
CT: control target
= control target key end

     0   :  { %8 = vsyncpa [#allocation3], 0  ;;  %s1294_s12 = smov 0   ;;  %s1597_s0 = inlined_call_operand.vmem [shape: s32[256,2], index: 0, kind: input, shape index: {}]   ;;  %s1598_s1 = inlined_call_operand.vmem [shape: f32[128,256], index: 1, kind: input, shape index: {}]   ;;  %s1599_s2 = inlined_call_operand.hbm [shape: f32[128,128], index: 2, kind: input, shape index: {}]   ;;  %s1600_s3 = inlined_call_operand.vmem [shape: f32[16,128], index: 3, kind: output, shape index: {}]  }
   0x1 LB: > { %s1300_s13 = sadd.s32 4294967295, %s1250_s12   ;;  %p941_p0 = scmp.ge.s32.totalorder %s1250_s12, 1  ;;  %s1250_s12 = sphi %s1294_s12, %s14_s12  }
   0x2   : > { %p113_p1 = scmp.lt.s32.totalorder %s1250_s12, 3  ;;  %s1252_s14 = smov [#allocation2]  }
   0x3   : > { %s128_s15 = sshll.u32 %s1252_s14, 4  ;;  %p1601_p3 = scmp.eq.s32.totalorder %s1300_s13, 0  ;;  %s129_s15 = int_to_ptr.vmem [resolvable:$true] %s128_s15 }
   0x4   : > { %p1304_p2 = pnand %p941_p0, %p113_p1  ;;  %s1212_s20 = scalar_lea.hbm %s1599_s2, 2048 }
   0x5   : > { %p1213_p6 = scmp.ne.s32.totalorder %s1599_s2, %s1212_s20  ;;  %p1219_p10 = scmp.lt.u32.totalorder %s1212_s20, %s1599_s2 }
   0x6   : > { %s1603_s16 = scalar_select %p1304_p2, 1, 0 }
   0x7   : > { %p1139_p4 = pneg %p1304_p2 }
   0x9   : > { %p1313_p5 = pnand %p1601_p3, %p1139_p4 }
   0xb   : > { %p1214_p7 = pneg %p1313_p5 }
   0xd   : > { %p1215_p8 = pnand %p1214_p7, %p1213_p6 }
   0xf   : > { %p1216_p9 = pneg %p1215_p8 }
  0x11   : > { %p1221_p11 = pnand %p1219_p10, %p1216_p9 }
  0x13   : > { %1224 = shalt.err (!%p1221_p11)
}
  0x14   : > { %s1225_s25 = scalar_lea.vmem %s129_s15, 2048  ;;  %p1233_p1 = scmp.lt.s32.totalorder %s129_s15, %s129_s15 }
  0x15   : > { %p1226_p12 = scmp.ne.s32.totalorder %s129_s15, %s1225_s25  ;;  %p1234_p4 = scmp.lt.s32.totalorder %s1225_s25, %s1225_s25 }
  0x17   : > { %p1228_p13 = pnand %p1226_p12, %p1214_p7  ;;  %p1235_p3 = por %p1234_p4, %p1233_p1 }
  0x19   : > { %p1229_p0 = pneg %p1228_p13 }
  0x1b   : > { %p1236_p2 = pnand %p1235_p3, %p1229_p0 }
  0x1d   : > { %1239 = shalt.err (!%p1236_p2)
}
  0x1e   : > { %s1253_s26 = smov 128   ;;  %s1254_s27 = smov 8  }
  0x1f   : > { %1142 = dma.hbm_to_vmem [thread:$0]  (!%p1313_p5), %s1599_s2, 2048, %s129_s15, [#allocation3], %s1253_s26, %s1253_s26, %s1254_s27  }
  0x20   : > { %p1605_p6 = scmp.ne.s32.totalorder %s1603_s16, 0 }
  0x21   : > { %p1606_p8 = scmp.eq.s32.totalorder (!%p1605_p6), %s1300_s13, 0 }
  0x22   : > { %153 = sbr.rel (%p1605_p6) target bundleno = 799 (0x31f), region = 32 }
  0x29   : > { %1245 = dma.done.wait (%p1606_p8), [#allocation3], 2048   ;;  %p1607_p7 = pmov %p1606_p8 }
  0x2a   : > { %s946_s30 = sshll.u32 %s1300_s13, 4  ;;  %v1255_v0 = vmov 0   ;;  %v1256_v6 = vmov 1   ;;  %v397_v8 = vld [vmem:[%s1598_s1 + $0x8] sm:$0xff]  ;;  %v399_v9 = vld [vmem:[%s1598_s1 + $0x18] sm:$0xff]  ;;  %v396_v12 = vld [vmem:[%s1598_s1] sm:$0xff] }
  0x2b   : > { %1247 = vsyncadd (%p1607_p7), [#allocation3], 4294965248  ;;  %1177 = vset.pattern.permute.xlu1 %v1255_v0  ;;  %1175 = vset.pattern.permute.xlu0 %v1255_v0  ;;  %p177_p2 = scmp.lt.s32.totalorder %s946_s30, 31  ;;  %v1071_v11 = vpack.c.bf16 %v399_v9, %v397_v8  ;;  %v398_v13 = vld [vmem:[%s1598_s1 + $0x10] sm:$0xff]  ;;  %v401_v14 = vld [vmem:[%s1598_s1 + $0x28] sm:$0xff]  ;;  %v1257_v22 = vmov 0.0  }
  0x2c   : > { %v1073_v15 = vpack.c.bf16 %v398_v13, %v396_v12  ;;  %v403_v16 = vld [vmem:[%s1598_s1 + $0x38] sm:$0xff]  ;;  %v400_v17 = vld [vmem:[%s1598_s1 + $0x20] sm:$0xff]  ;;  %v402_v18 = vld [vmem:[%s1598_s1 + $0x30] sm:$0xff]  ;;  %492 = vmatprep.mubr.f32.mxu0 %v1257_v22  ;;  %p182_p3 = scmp.lt.s32.totalorder %s1300_s13, 1  ;;  %s1259_s29 = smov 8  }
  0x2d   : > { %s1609_s30 = smov (!%p177_p2, %s946_s30), 31  ;;  %1072 = vmatprep.subr.bf16.mxu0 %v1071_v11  ;;  %v1075_v19 = vpack.c.bf16 %v403_v16, %v401_v14  ;;  %v405_v20 = vld [vmem:[%s1598_s1 + $0x48] sm:$0xff]  ;;  %v407_v21 = vld [vmem:[%s1598_s1 + $0x58] sm:$0xff]  ;;  %v1077_v23 = vpack.c.bf16 %v402_v18, %v400_v17  ;;  %v404_v26 = vld [vmem:[%s1598_s1 + $0x40] sm:$0xff]  ;;  %s1263_s5 = smov 32  }
  0x2e   : > { %s947_s4 = sshll.u32 %s1609_s30, 3  ;;  %1074 = vmatpush1.bf16.msra.mxu0 %v1073_v15  ;;  %v1079_v25 = vpack.c.bf16 %v407_v21, %v405_v20  ;;  %v406_v27 = vld [vmem:[%s1598_s1 + $0x50] sm:$0xff]  ;;  %v409_v29 = vld [vmem:[%s1598_s1 + $0x68] sm:$0xff]  ;;  %v411_v30 = vld [vmem:[%s1598_s1 + $0x78] sm:$0xff]  ;;  %s1611_s13 = smov (!%p182_p3, %s1300_s13), 1 }
  0x2f   : > { %s1343_s7 = scalar_lea.vmem %s1597_s0, %s947_s4  ;;  %1076 = vmatprep.subr.bf16.mxu0 %v1075_v19  ;;  %v1081_v31 = vpack.c.bf16 %v406_v27, %v404_v26  ;;  %v1083_v33 = vpack.c.bf16 %v411_v30, %v409_v29  ;;  %v408_v34 = vld [vmem:[%s1598_s1 + $0x60] sm:$0xff]  ;;  %v410_v35 = vld [vmem:[%s1598_s1 + $0x70] sm:$0xff]  ;;  %v413_v37 = vld [vmem:[%s1598_s1 + $0x88] sm:$0xff]  ;;  %s1261_s30 = smov 16  }
  0x30   : > { %v187_v1 = vld [vmem:[%s1343_s7 + $0x8] sm:$0xff]  ;;  %v186_v2 = vld [vmem:[%s1343_s7] sm:$0xff]  ;;  %v188_v5 = vld [vmem:[%s1343_s7 + $0x10] sm:$0xff]  ;;  %v1085_v39 = vpack.c.bf16 %v410_v35, %v408_v34  ;;  %s1262_s4 = smov 40   ;;  %s1264_s6 = smov 56  }
  0x31   : > { %208 = vperm.xlu1 %1177, %v187_v1   ;;  %205 = vperm.xlu0 %1175, %v186_v2   ;;  %v269_v3 = vadd.s32 8, %v187_v1  ;;  %v268_v4 = vadd.s32 8, %v186_v2  ;;  %v189_v7 = vld [vmem:[%s1343_s7 + $0x18] sm:$0xff]  ;;  %v270_v10 = vadd.s32 8, %v188_v5  ;;  %v190_v28 = vld [vmem:[%s1343_s7 + $0x20] sm:$0xff]  ;;  %v191_v36 = vld [vmem:[%s1343_s7 + $0x28] sm:$0xff] }
  0x32   : > { %v271_v24 = vadd.s32 8, %v189_v7  ;;  %1078 = vmatpush1.bf16.msra.mxu0 %v1077_v23  ;;  %v272_v32 = vadd.s32 8, %v190_v28  ;;  %v415_v38 = vld [vmem:[%s1598_s1 + $0x98] sm:$0xff]  ;;  %v273_v40 = vadd.s32 8, %v191_v36  ;;  %v412_v42 = vld [vmem:[%s1598_s1 + $0x80] sm:$0xff]  ;;  %v414_v43 = vld [vmem:[%s1598_s1 + $0x90] sm:$0xff] }
  0x33   : > { %1080 = vmatprep.subr.bf16.mxu0 %v1079_v25  ;;  %v1087_v41 = vpack.c.bf16 %v415_v38, %v413_v37  ;;  %v192_v44 = vld [vmem:[%s1343_s7 + $0x30] sm:$0xff]  ;;  %v417_v45 = vld [vmem:[%s1598_s1 + $0xa8] sm:$0xff]  ;;  %v419_v46 = vld [vmem:[%s1598_s1 + $0xb8] sm:$0xff]  ;;  %v1089_v47 = vpack.c.bf16 %v414_v43, %v412_v42  ;;  %v1258_v38 = vmov 1.0   ;;  %s1265_s8 = smov 48   ;;  %s1266_s9 = smov 72  }
  0x34   : > { %v274_v48 = vadd.s32 8, %v192_v44  ;;  %v1091_v49 = vpack.c.bf16 %v419_v46, %v417_v45  ;;  %v416_v50 = vld [vmem:[%s1598_s1 + $0xa0] sm:$0xff]  ;;  %v418_v51 = vld [vmem:[%s1598_s1 + $0xb0] sm:$0xff]  ;;  %v193_v52 = vld [vmem:[%s1343_s7 + $0x38] sm:$0xff]  ;;  %s1267_s10 = smov 64   ;;  %s1268_s11 = smov 88  }
  0x35   : > { %1178 = vset.pattern.permute.xlu1 %v1256_v6  ;;  %1176 = vset.pattern.permute.xlu0 %v1256_v6  ;;  %v421_v53 = vld [vmem:[%s1598_s1 + $0xc8] sm:$0xff]  ;;  %v423_v54 = vld [vmem:[%s1598_s1 + $0xd8] sm:$0xff]  ;;  %v1093_v55 = vpack.c.bf16 %v418_v51, %v416_v50  ;;  %v275_v56 = vadd.s32 8, %v193_v52  ;;  %v420_v58 = vld [vmem:[%s1598_s1 + $0xc0] sm:$0xff]  ;;  %s1269_s14 = smov 80   ;;  %s1270_s15 = smov 104  }
  0x36   : > { %288 = vperm.xlu1 %1178, %v269_v3   ;;  %285 = vperm.xlu0 %1176, %v268_v4   ;;  %v1095_v57 = vpack.c.bf16 %v423_v54, %v421_v53  ;;  %v422_v59 = vld [vmem:[%s1598_s1 + $0xd0] sm:$0xff]  ;;  %v194_v60 = vld [vmem:[%s1343_s7 + $0x40] sm:$0xff]  ;;  %v425_v61 = vld [vmem:[%s1598_s1 + $0xe8] sm:$0xff]  ;;  %s1271_s16 = smov 96   ;;  %s1272_s17 = smov 120  }
  0x37   : > { %1082 = vmatpush1.bf16.msra.mxu0 %v1081_v31  ;;  %v427_v62 = vld [vmem:[%s1598_s1 + $0xf8] sm:$0xff]  ;;  %v1097_v63 = vpack.c.bf16 %v422_v59, %v420_v58  ;;  %v424_v2 = vld [vmem:[%s1598_s1 + $0xe0] sm:$0xff]  ;;  %v426_v3 = vld [vmem:[%s1598_s1 + $0xf0] sm:$0xff]  ;;  %s1273_s18 = smov 112  }
  0x38   : > { %1084 = vmatprep.subr.bf16.mxu0 %v1083_v33  ;;  %v1099_v1 = vpack.c.bf16 %v427_v62, %v425_v61  ;;  %v195_v4 = vld [vmem:[%s1343_s7 + $0x48] sm:$0xff]  ;;  %v197_v9 = vld [vmem:[%s1343_s7 + $0x58] sm:$0xff]  ;;  %v198_v11 = vld [vmem:[%s1343_s7 + $0x60] sm:$0xff] }
  0x39   : > { %v277_v6 = vadd.s32 8, %v195_v4  ;;  %v280_v12 = vadd.s32 8, %v198_v11  ;;  %v199_v13 = vld [vmem:[%s1343_s7 + $0x68] sm:$0xff]  ;;  %v200_v15 = vld [vmem:[%s1343_s7 + $0x70] sm:$0xff]  ;;  %v201_v17 = vld [vmem:[%s1343_s7 + $0x78] sm:$0xff] }
  0x3a   : > { %1179 = vset.pattern.permute.xlu1 %v1255_v0  ;;  %291 = vperm.xlu0 %1176, %v270_v10   ;;  %v276_v0 = vadd.s32 8, %v194_v60  ;;  %v279_v10 = vadd.s32 8, %v197_v9  ;;  %v281_v14 = vadd.s32 8, %v199_v13  ;;  %v282_v16 = vadd.s32 8, %v200_v15  ;;  %v605_v19 = vld [vmem:[#allocation2] sm:$0xff]  ;;  %v606_v20 = vld [vmem:[#allocation2 + $0x8] sm:$0xff] }
  0x3b   : > { %211 = vperm.xlu1 %1179, %v188_v5   ;;  %1086 = vmatpush1.bf16.msra.mxu0 %v1085_v39  ;;  %v1101_v5 = vpack.c.bf16 %v426_v3, %v424_v2  ;;  %v283_v18 = vadd.s32 8, %v201_v17  ;;  %v607_v21 = vld [vmem:[#allocation2 + $0x10] sm:$0xff]  ;;  %v1103_v23 = vpack.c.bf16 %v606_v20, %v605_v19  ;;  %v609_v26 = vld [vmem:[#allocation2 + $0x20] sm:$0xff]  ;;  %v610_v27 = vld [vmem:[#allocation2 + $0x28] sm:$0xff] }
  0x3c   : > { %1088 = vmatprep.subr.bf16.mxu0 %v1087_v41  ;;  %v611_v29 = vld [vmem:[#allocation2 + $0x30] sm:$0xff]  ;;  %v612_v30 = vld [vmem:[#allocation2 + $0x38] sm:$0xff]  ;;  %v613_v3 = vld [vmem:[#allocation2 + $0x40] sm:$0xff] }
  0x3d   : > { %1104 = vmatprep.subr.bf16.mxu1 %v1103_v23  ;;  %v1115_v31 = vpack.c.bf16 %v612_v30, %v611_v29 }
  0x3e   : > { %294 = vperm.xlu0 %1176, %v271_v24   ;;  %v608_v24 = vld [vmem:[#allocation2 + $0x18] sm:$0xff]  ;;  %1106 = vmatpush3.bf16.msra.mxu1 %v1103_v23 }
  0x3f   : > { %214 = vperm.xlu1 %1179, %v189_v7   ;;  %1090 = vmatpush1.bf16.msra.mxu0 %v1089_v47  ;;  %v196_v7 = vld [vmem:[%s1343_s7 + $0x50] sm:$0xff]  ;;  %v1107_v25 = vpack.c.bf16 %v608_v24, %v607_v21  ;;  %s948_s7 = sshll.u32 %s1611_s13, 3  ;;  %s1260_s13 = smov 24  }
  0x40   : > { %1092 = vmatprep.subr.bf16.mxu0 %v1091_v49  ;;  %v278_v8 = vadd.s32 8, %v196_v7  ;;  %s1561_s28 = scalar_lea.vmem %s1600_s3, %s948_s7 }
  0x41   : > { %1108 = vmatprep.subr.bf16.mxu1 %v1107_v25 }
  0x42   : > { %297 = vperm.xlu0 %1176, %v272_v32   ;;  %1110 = vmatpush3.bf16.msra.mxu1 %v1107_v25  ;;  %v202_v32 = vlaneseq }
  0x43   : > { %217 = vperm.xlu1 %1179, %v190_v28   ;;  %1094 = vmatpush1.bf16.msra.mxu0 %v1093_v55  ;;  %v1111_v28 = vpack.c.bf16 %v610_v27, %v609_v26 }
  0x44   : > { %1096 = vmatprep.subr.bf16.mxu0 %v1095_v57  ;;  %v1458_v35 = vand.u32 127, %v202_v32 }
  0x45   : > { %1112 = vmatprep.subr.bf16.mxu1 %v1111_v28 }
  0x46   : > { %300 = vperm.xlu0 %1176, %v273_v40   ;;  %1114 = vmatpush3.bf16.msra.mxu1 %v1111_v28 }
  0x47   : > { %220 = vperm.xlu1 %1179, %v191_v36   ;;  %1098 = vmatpush1.bf16.msra.mxu0 %v1097_v63 }
  0x48   : > { %1100 = vmatprep.subr.bf16.mxu0 %v1099_v1  ;;  %1116 = vmatprep.subr.bf16.mxu1 %v1115_v31 }
  0x4a   : > { %303 = vperm.xlu0 %1176, %v274_v48   ;;  %1118 = vmatpush3.bf16.msra.mxu1 %v1115_v31 }
  0x4b   : > { %223 = vperm.xlu1 %1179, %v192_v44   ;;  %1102 = vmatpush1.bf16.msra.mxu0 %v1101_v5 }
  0x4e   : > { %306 = vperm.xlu0 %1176, %v275_v56  }
  0x4f   : > { %226 = vperm.xlu1 %1179, %v193_v52  }
  0x52   : > { %309 = vperm.xlu0 %1176, %v276_v0  }
  0x53   : > { %229 = vperm.xlu1 %1179, %v194_v60  }
  0x56   : > { %312 = vperm.xlu0 %1176, %v277_v6   ;;  %v615_v6 = vld [vmem:[#allocation2 + $0x50] sm:$0xff] }
  0x57   : > { %232 = vperm.xlu1 %1179, %v195_v4   ;;  %v614_v4 = vld [vmem:[#allocation2 + $0x48] sm:$0xff] }
  0x58   : > { %v1119_v5 = vpack.c.bf16 %v614_v4, %v613_v3 }
  0x5a   : > { %315 = vperm.xlu0 %1176, %v278_v8   ;;  %1120 = vmatprep.subr.bf16.mxu1 %v1119_v5 }
  0x5b   : > { %235 = vperm.xlu1 %1179, %v196_v7   ;;  %1122 = vmatpush3.bf16.msra.mxu1 %v1119_v5  ;;  %v616_v7 = vld [vmem:[#allocation2 + $0x58] sm:$0xff] }
  0x5c   : > { %v1123_v8 = vpack.c.bf16 %v616_v7, %v615_v6 }
  0x5e   : > { %318 = vperm.xlu0 %1176, %v279_v10   ;;  %1124 = vmatprep.subr.bf16.mxu1 %v1123_v8  ;;  %v618_v10 = vld [vmem:[#allocation2 + $0x68] sm:$0xff] }
  0x5f   : > { %238 = vperm.xlu1 %1179, %v197_v9   ;;  %1126 = vmatpush3.bf16.msra.mxu1 %v1123_v8  ;;  %v617_v9 = vld [vmem:[#allocation2 + $0x60] sm:$0xff] }
  0x62   : > { %321 = vperm.xlu0 %1176, %v280_v12   ;;  %v619_v12 = vld [vmem:[#allocation2 + $0x70] sm:$0xff] }
  0x63   : > { %241 = vperm.xlu1 %1179, %v198_v11   ;;  %v1127_v11 = vpack.c.bf16 %v618_v10, %v617_v9 }
  0x65   : > { %1128 = vmatprep.subr.bf16.mxu1 %v1127_v11 }
  0x66   : > { %324 = vperm.xlu0 %1176, %v281_v14   ;;  %1130 = vmatpush3.bf16.msra.mxu1 %v1127_v11 }
  0x67   : > { %244 = vperm.xlu1 %1179, %v199_v13  }
  0x6a   : > { %327 = vperm.xlu0 %1176, %v282_v16  }
  0x6b   : > { %247 = vperm.xlu1 %1179, %v200_v15  }
  0x6e   : > { %330 = vperm.xlu0 %1176, %v283_v18  }
  0x6f   : > { %250 = vperm.xlu1 %1179, %v201_v17  }
  0xb0   : > { %v206_v33 = vpop.permute.xlu0 %205  ;;  %v209_v34 = vpop.permute.xlu1 %208 }
  0xb1   : > { %vm252_vm1 = vcmp.eq.s32.totalorder %v206_v33, %v1458_v35  ;;  %vm253_vm4 = vcmp.eq.s32.totalorder %v209_v34, %v1458_v35 }
  0xb5   : > { %v289_v36 = vpop.permute.xlu1 %288  ;;  %v286_v37 = vpop.permute.xlu0 %285 }
  0xb6   : > { %vm332_vm0 = vcmp.eq.s32.totalorder %v286_v37, %v1458_v35  ;;  %vm333_vm3 = vcmp.eq.s32.totalorder %v289_v36, %v1458_v35 }
  0xb7   : > { %vm348_vm2 = vmor %vm252_vm1, %vm332_vm0 }
  0xb8   : > { %965 = vmatmul.mubr.msk.f32.vlgmr.msra.gmra.mrb[0].mxu0 %vm348_vm2, %v1258_v38  ;;  %vm349_vm5 = vmor %vm253_vm4, %vm333_vm3 }
  0xb9   : > { %v292_v39 = vpop.permute.xlu0 %291  ;;  %498 = vmatprep.mubr.f32.mxu0 %v1257_v22 }
  0xba   : > { %v212_v40 = vpop.permute.xlu1 %211  ;;  %vm334_vm6 = vcmp.eq.s32.totalorder %v292_v39, %v1458_v35 }
  0xbb   : > { %vm254_vm7 = vcmp.eq.s32.totalorder %v212_v40, %v1458_v35 }
  0xbc   : > { %966 = vmatmul.mubr.msk.f32.gmra.mrb[2].mxu0 %vm349_vm5, %v1258_v38  ;;  %vm350_vm8 = vmor %vm254_vm7, %vm334_vm6 }
  0xbd   : > { %v295_v41 = vpop.permute.xlu0 %294  ;;  %504 = vmatprep.mubr.f32.mxu0 %v1257_v22 }
  0xbe   : > { %v215_v42 = vpop.permute.xlu1 %214  ;;  %vm335_vm9 = vcmp.eq.s32.totalorder %v295_v41, %v1458_v35 }
  0xbf   : > { %vm255_vm10 = vcmp.eq.s32.totalorder %v215_v42, %v1458_v35 }
  0xc0   : > { %967 = vmatmul.mubr.msk.f32.gmra.mrb[4].mxu0 %vm350_vm8, %v1258_v38  ;;  %vm351_vm11 = vmor %vm255_vm10, %vm335_vm9 }
  0xc1   : > { %v298_v43 = vpop.permute.xlu0 %297  ;;  %510 = vmatprep.mubr.f32.mxu0 %v1257_v22 }
  0xc2   : > { %v218_v44 = vpop.permute.xlu1 %217  ;;  %vm336_vm12 = vcmp.eq.s32.totalorder %v298_v43, %v1458_v35 }
  0xc3   : > { %vm256_vm13 = vcmp.eq.s32.totalorder %v218_v44, %v1458_v35 }
  0xc4   : > { %968 = vmatmul.mubr.msk.f32.gmra.mrb[6].mxu0 %vm351_vm11, %v1258_v38  ;;  %vm352_vm14 = vmor %vm256_vm13, %vm336_vm12 }
  0xc5   : > { %v301_v45 = vpop.permute.xlu0 %300  ;;  %516 = vmatprep.mubr.f32.mxu0 %v1257_v22 }
  0xc6   : > { %v221_v46 = vpop.permute.xlu1 %220  ;;  %vm337_vm15 = vcmp.eq.s32.totalorder %v301_v45, %v1458_v35 }
  0xc7   : > { %vm257_vm0 = vcmp.eq.s32.totalorder %v221_v46, %v1458_v35 }
  0xc8   : > { %969 = vmatmul.mubr.msk.f32.gmra.mrb[8].mxu0 %vm352_vm14, %v1258_v38  ;;  %vm353_vm1 = vmor %vm257_vm0, %vm337_vm15 }
  0xc9   : > { %v304_v47 = vpop.permute.xlu0 %303  ;;  %522 = vmatprep.mubr.f32.mxu0 %v1257_v22 }
  0xca   : > { %v224_v48 = vpop.permute.xlu1 %223  ;;  %vm338_vm2 = vcmp.eq.s32.totalorder %v304_v47, %v1458_v35 }
  0xcb   : > { %vm258_vm3 = vcmp.eq.s32.totalorder %v224_v48, %v1458_v35 }
  0xcc   : > { %970 = vmatmul.mubr.msk.f32.gmra.mrb[10].mxu0 %vm353_vm1, %v1258_v38  ;;  %vm354_vm4 = vmor %vm258_vm3, %vm338_vm2 }
  0xcd   : > { %v307_v49 = vpop.permute.xlu0 %306  ;;  %528 = vmatprep.mubr.f32.mxu0 %v1257_v22 }
  0xce   : > { %v227_v50 = vpop.permute.xlu1 %226  ;;  %vm339_vm5 = vcmp.eq.s32.totalorder %v307_v49, %v1458_v35 }
  0xcf   : > { %vm259_vm6 = vcmp.eq.s32.totalorder %v227_v50, %v1458_v35 }
  0xd0   : > { %971 = vmatmul.mubr.msk.f32.gmra.mrb[12].mxu0 %vm354_vm4, %v1258_v38  ;;  %vm355_vm7 = vmor %vm259_vm6, %vm339_vm5 }
  0xd1   : > { %v310_v51 = vpop.permute.xlu0 %309  ;;  %534 = vmatprep.mubr.f32.mxu0 %v1257_v22 }
  0xd2   : > { %v230_v52 = vpop.permute.xlu1 %229  ;;  %vm340_vm8 = vcmp.eq.s32.totalorder %v310_v51, %v1458_v35 }
  0xd3   : > { %vm260_vm9 = vcmp.eq.s32.totalorder %v230_v52, %v1458_v35 }
  0xd4   : > { %972 = vmatmul.mubr.msk.f32.gmra.mrb[14].mxu0 %vm355_vm7, %v1258_v38  ;;  %vm356_vm10 = vmor %vm260_vm9, %vm340_vm8 }
  0xd5   : > { %v313_v53 = vpop.permute.xlu0 %312  ;;  %540 = vmatprep.mubr.f32.mxu0 %v1257_v22 }
  0xd6   : > { %v233_v54 = vpop.permute.xlu1 %232  ;;  %vm341_vm11 = vcmp.eq.s32.totalorder %v313_v53, %v1458_v35 }
  0xd7   : > { %vm261_vm12 = vcmp.eq.s32.totalorder %v233_v54, %v1458_v35 }
  0xd8   : > { %973 = vmatmul.mubr.msk.f32.gmra.mrb[16].mxu0 %vm356_vm10, %v1258_v38  ;;  %vm357_vm13 = vmor %vm261_vm12, %vm341_vm11 }
  0xd9   : > { %v316_v55 = vpop.permute.xlu0 %315  ;;  %546 = vmatprep.mubr.f32.mxu0 %v1257_v22 }
  0xda   : > { %v236_v56 = vpop.permute.xlu1 %235  ;;  %vm342_vm14 = vcmp.eq.s32.totalorder %v316_v55, %v1458_v35 }
  0xdb   : > { %vm262_vm15 = vcmp.eq.s32.totalorder %v236_v56, %v1458_v35 }
  0xdc   : > { %974 = vmatmul.mubr.msk.f32.gmra.mrb[18].mxu0 %vm357_vm13, %v1258_v38  ;;  %vm358_vm0 = vmor %vm262_vm15, %vm342_vm14 }
  0xdd   : > { %v319_v57 = vpop.permute.xlu0 %318  ;;  %552 = vmatprep.mubr.f32.mxu0 %v1257_v22 }
  0xde   : > { %v239_v58 = vpop.permute.xlu1 %238  ;;  %vm343_vm1 = vcmp.eq.s32.totalorder %v319_v57, %v1458_v35 }
  0xdf   : > { %vm263_vm2 = vcmp.eq.s32.totalorder %v239_v58, %v1458_v35 }
  0xe0   : > { %975 = vmatmul.mubr.msk.f32.gmra.mrb[20].mxu0 %vm358_vm0, %v1258_v38  ;;  %vm359_vm3 = vmor %vm263_vm2, %vm343_vm1  ;;  %vm782_vm0 = vcmask 64512   ;;  %vm788_vm1 = vcmask 130112   ;;  %vm794_vm2 = vcmask 195712  }
  0xe1   : > { %v322_v59 = vpop.permute.xlu0 %321  ;;  %558 = vmatprep.mubr.f32.mxu0 %v1257_v22 }
  0xe2   : > { %v242_v60 = vpop.permute.xlu1 %241  ;;  %vm344_vm4 = vcmp.eq.s32.totalorder %v322_v59, %v1458_v35 }
  0xe3   : > { %vm264_vm5 = vcmp.eq.s32.totalorder %v242_v60, %v1458_v35 }
  0xe4   : > { %976 = vmatmul.mubr.msk.f32.gmra.mrb[22].mxu0 %vm359_vm3, %v1258_v38  ;;  %vm360_vm6 = vmor %vm264_vm5, %vm344_vm4  ;;  %vm800_vm3 = vcmask 261312   ;;  %vm806_vm4 = vcmask 326912   ;;  %vm812_vm5 = vcmask 392512  }
  0xe5   : > { %v325_v61 = vpop.permute.xlu0 %324  ;;  %564 = vmatprep.mubr.f32.mxu0 %v1257_v22 }
  0xe6   : > { %v245_v62 = vpop.permute.xlu1 %244  ;;  %vm345_vm7 = vcmp.eq.s32.totalorder %v325_v61, %v1458_v35 }
  0xe7   : > { %vm265_vm8 = vcmp.eq.s32.totalorder %v245_v62, %v1458_v35 }
  0xe8   : > { %977 = vmatmul.mubr.msk.f32.gmra.mrb[24].mxu0 %vm360_vm6, %v1258_v38  ;;  %vm361_vm9 = vmor %vm265_vm8, %vm345_vm7  ;;  %vm818_vm6 = vcmask 458112   ;;  %vm824_vm7 = vcmask 523712   ;;  %vm830_vm8 = vcmask 589312  }
  0xe9   : > { %v328_v63 = vpop.permute.xlu0 %327  ;;  %570 = vmatprep.mubr.f32.mxu0 %v1257_v22 }
  0xea   : > { %v248_v0 = vpop.permute.xlu1 %247  ;;  %vm346_vm10 = vcmp.eq.s32.totalorder %v328_v63, %v1458_v35 }
  0xeb   : > { %vm266_vm11 = vcmp.eq.s32.totalorder %v248_v0, %v1458_v35 }
  0xec   : > { %978 = vmatmul.mubr.msk.f32.gmra.mrb[26].mxu0 %vm361_vm9, %v1258_v38  ;;  %vm362_vm12 = vmor %vm266_vm11, %vm346_vm10  ;;  %vm836_vm9 = vcmask 654912   ;;  %vm842_vm10 = vcmask 720512   ;;  %vm848_vm11 = vcmask 786112  }
  0xed   : > { %v331_v1 = vpop.permute.xlu0 %330  ;;  %576 = vmatprep.mubr.f32.mxu0 %v1257_v22 }
  0xee   : > { %v251_v2 = vpop.permute.xlu1 %250  ;;  %vm347_vm13 = vcmp.eq.s32.totalorder %v331_v1, %v1458_v35 }
  0xef   : > { %vm267_vm14 = vcmp.eq.s32.totalorder %v251_v2, %v1458_v35 }
  0xf0   : > { %979 = vmatmul.mubr.msk.f32.gmra.mrb[28].mxu0 %vm362_vm12, %v1258_v38  ;;  %vm363_vm15 = vmor %vm267_vm14, %vm347_vm13  ;;  %vm854_vm12 = vcmask 851712   ;;  %vm860_vm13 = vcmask 917312   ;;  %vm866_vm14 = vcmask 982912  }
  0xf1   : > { %582 = vmatprep.mubr.f32.mxu0 %v1257_v22  ;;  %v620_v22 = vld [vmem:[#allocation2 + $0x78] sm:$0xff] }
  0xf2   : > { %v1131_v13 = vpack.c.bf16 %v620_v22, %v619_v12 }
  0xf4   : > { %980 = vmatmul.mubr.msk.f32.gmra.mrb[30].mxu0 %vm363_vm15, %v1258_v38  ;;  %1132 = vmatprep.subr.bf16.mxu1 %v1131_v13  ;;  %vm872_vm15 = vcmask 1048512  }
  0xf5   : > { %1134 = vmatpush3.bf16.msra.mxu1 %v1131_v13 }
 0x18b   : > { %v494_v14 = vpop.f32.mrb[0].mxu0 }
 0x18c   : > { %1180 = vtanh.f32 %v494_v14  ;;  %v1523_v15 = vpop.f32.mrb[1].mxu0 }
 0x18f   : > { %v500_v16 = vpop.f32.mrb[2].mxu0 }
 0x190   : > { %1182 = vtanh.f32 %v500_v16  ;;  %v1525_v17 = vpop.f32.mrb[3].mxu0 }
 0x193   : > { %v506_v18 = vpop.f32.mrb[4].mxu0 }
 0x194   : > { %1184 = vtanh.f32 %v506_v18  ;;  %v1527_v19 = vpop.f32.mrb[5].mxu0 }
 0x196   : > { %v1181_v20 = vpop.eup %1180 }
 0x197   : > { %v512_v21 = vpop.f32.mrb[6].mxu0  ;;  %1047 = vmatprep.mubr.f32.mxu1 %v1181_v20 }
 0x198   : > { %1186 = vtanh.f32 %v512_v21  ;;  %v1529_v23 = vpop.f32.mrb[7].mxu0 }
 0x19a   : > { %v1183_v24 = vpop.eup %1182 }
 0x19b   : > { %v518_v25 = vpop.f32.mrb[8].mxu0  ;;  %1048 = vmatmul.mubr.f32.vlgmr.msra.gmra.mrb[0].mxu1 %v1183_v24 }
 0x19c   : > { %1188 = vtanh.f32 %v518_v25  ;;  %v1531_v26 = vpop.f32.mrb[9].mxu0 }
 0x19e   : > { %v1185_v27 = vpop.eup %1184 }
 0x19f   : > { %v524_v28 = vpop.f32.mrb[10].mxu0  ;;  %1050 = vmatprep.mubr.f32.mxu1 %v1185_v27 }
 0x1a0   : > { %1190 = vtanh.f32 %v524_v28  ;;  %v1533_v29 = vpop.f32.mrb[11].mxu0 }
 0x1a2   : > { %v1187_v30 = vpop.eup %1186 }
 0x1a3   : > { %v530_v31 = vpop.f32.mrb[12].mxu0  ;;  %1051 = vmatmul.mubr.f32.gmra.mrb[2].mxu1 %v1187_v30 }
 0x1a4   : > { %1192 = vtanh.f32 %v530_v31  ;;  %v1535_v32 = vpop.f32.mrb[13].mxu0 }
 0x1a6   : > { %v1189_v33 = vpop.eup %1188 }
 0x1a7   : > { %v536_v34 = vpop.f32.mrb[14].mxu0  ;;  %1053 = vmatprep.mubr.f32.mxu1 %v1189_v33 }
 0x1a8   : > { %1194 = vtanh.f32 %v536_v34  ;;  %v1537_v35 = vpop.f32.mrb[15].mxu0 }
 0x1aa   : > { %v1191_v36 = vpop.eup %1190 }
 0x1ab   : > { %v542_v37 = vpop.f32.mrb[16].mxu0  ;;  %1054 = vmatmul.mubr.f32.gmra.mrb[4].mxu1 %v1191_v36 }
 0x1ac   : > { %1196 = vtanh.f32 %v542_v37  ;;  %v1539_v38 = vpop.f32.mrb[17].mxu0 }
 0x1ae   : > { %v1193_v39 = vpop.eup %1192 }
 0x1af   : > { %v548_v40 = vpop.f32.mrb[18].mxu0  ;;  %1056 = vmatprep.mubr.f32.mxu1 %v1193_v39 }
 0x1b0   : > { %1198 = vtanh.f32 %v548_v40  ;;  %v1541_v41 = vpop.f32.mrb[19].mxu0 }
 0x1b2   : > { %v1195_v42 = vpop.eup %1194 }
 0x1b3   : > { %v554_v43 = vpop.f32.mrb[20].mxu0  ;;  %1057 = vmatmul.mubr.f32.gmra.mrb[6].mxu1 %v1195_v42 }
 0x1b4   : > { %1200 = vtanh.f32 %v554_v43  ;;  %v1543_v44 = vpop.f32.mrb[21].mxu0 }
 0x1b6   : > { %v1197_v45 = vpop.eup %1196 }
 0x1b7   : > { %v560_v46 = vpop.f32.mrb[22].mxu0  ;;  %1059 = vmatprep.mubr.f32.mxu1 %v1197_v45 }
 0x1b8   : > { %1202 = vtanh.f32 %v560_v46  ;;  %v1545_v47 = vpop.f32.mrb[23].mxu0 }
 0x1ba   : > { %v1199_v48 = vpop.eup %1198 }
 0x1bb   : > { %v566_v49 = vpop.f32.mrb[24].mxu0  ;;  %1060 = vmatmul.mubr.f32.gmra.mrb[8].mxu1 %v1199_v48 }
 0x1bc   : > { %1204 = vtanh.f32 %v566_v49  ;;  %v1547_v50 = vpop.f32.mrb[25].mxu0 }
 0x1be   : > { %v1201_v51 = vpop.eup %1200 }
 0x1bf   : > { %v572_v52 = vpop.f32.mrb[26].mxu0  ;;  %1062 = vmatprep.mubr.f32.mxu1 %v1201_v51 }
 0x1c0   : > { %1206 = vtanh.f32 %v572_v52  ;;  %v1549_v53 = vpop.f32.mrb[27].mxu0 }
 0x1c2   : > { %v1203_v54 = vpop.eup %1202 }
 0x1c3   : > { %v578_v55 = vpop.f32.mrb[28].mxu0  ;;  %1063 = vmatmul.mubr.f32.gmra.mrb[10].mxu1 %v1203_v54 }
 0x1c4   : > { %1208 = vtanh.f32 %v578_v55  ;;  %v1551_v56 = vpop.f32.mrb[29].mxu0 }
 0x1c6   : > { %v1205_v57 = vpop.eup %1204 }
 0x1c7   : > { %v584_v58 = vpop.f32.mrb[30].mxu0  ;;  %1065 = vmatprep.mubr.f32.mxu1 %v1205_v57 }
 0x1c8   : > { %1210 = vtanh.f32 %v584_v58  ;;  %v1553_v59 = vpop.f32.mrb[31].mxu0 }
 0x1ca   : > { %v1207_v60 = vpop.eup %1206 }
 0x1cb   : > { %1066 = vmatmul.mubr.f32.gmra.mrb[12].mxu1 %v1207_v60 }
 0x1ce   : > { %v1209_v61 = vpop.eup %1208 }
 0x1cf   : > { %1068 = vmatprep.mubr.f32.mxu1 %v1209_v61 }
 0x1d2   : > { %v1211_v62 = vpop.eup %1210 }
 0x1d3   : > { %1069 = vmatmul.mubr.f32.gmra.mrb[14].mxu1 %v1211_v62 }
 0x26e   : > { %v1049_v63 = vpop.f32.mrb[0].mxu1 }
 0x26f   : > { %v767_v0 = vadd.f32 %v1049_v63, %v1525_v17  ;;  %v687_v1 = vpop.f32.mrb[1].mxu1 }
 0x270   : > { %v766_v2 = vadd.f32 %v687_v1, %v1523_v15 }
 0x271   : > { %785 = vrot.lane.b32.xlu1 %v767_v0, %s1259_s29 }
 0x272   : > { %783 = vst.msk [vmem:[%s1561_s28] sm:$0xff] %vm782_vm0, %v766_v2 }
 0x276   : > { %v1052_v3 = vpop.f32.mrb[2].mxu1 }
 0x277   : > { %v769_v4 = vadd.f32 %v1052_v3, %v1529_v23  ;;  %v697_v5 = vpop.f32.mrb[3].mxu1 }
 0x278   : > { %v768_v6 = vadd.f32 %v697_v5, %v1527_v19 }
 0x279   : > { %797 = vrot.lane.b32.xlu1 %v769_v4, %s1260_s13 }
 0x27a   : > { %791 = vrot.lane.b32.xlu0 %v768_v6, %s1261_s30 }
 0x27e   : > { %v1055_v7 = vpop.f32.mrb[4].mxu1 }
 0x27f   : > { %v771_v8 = vadd.f32 %v1055_v7, %v1533_v29  ;;  %v707_v9 = vpop.f32.mrb[5].mxu1 }
 0x280   : > { %v770_v10 = vadd.f32 %v707_v9, %v1531_v26 }
 0x281   : > { %809 = vrot.lane.b32.xlu1 %v771_v8, %s1262_s4 }
 0x282   : > { %803 = vrot.lane.b32.xlu0 %v770_v10, %s1263_s5 }
 0x286   : > { %v1058_v11 = vpop.f32.mrb[6].mxu1 }
 0x287   : > { %v773_v12 = vadd.f32 %v1058_v11, %v1537_v35  ;;  %v717_v22 = vpop.f32.mrb[7].mxu1 }
 0x288   : > { %v772_v13 = vadd.f32 %v717_v22, %v1535_v32 }
 0x289   : > { %821 = vrot.lane.b32.xlu1 %v773_v12, %s1264_s6 }
 0x28a   : > { %815 = vrot.lane.b32.xlu0 %v772_v13, %s1265_s8 }
 0x28e   : > { %v1061_v14 = vpop.f32.mrb[8].mxu1 }
 0x28f   : > { %v775_v15 = vadd.f32 %v1061_v14, %v1541_v41  ;;  %v727_v16 = vpop.f32.mrb[9].mxu1 }
 0x290   : > { %v774_v17 = vadd.f32 %v727_v16, %v1539_v38 }
 0x291   : > { %833 = vrot.lane.b32.xlu1 %v775_v15, %s1266_s9 }
 0x292   : > { %827 = vrot.lane.b32.xlu0 %v774_v17, %s1267_s10 }
 0x296   : > { %v1064_v18 = vpop.f32.mrb[10].mxu1 }
 0x297   : > { %v777_v19 = vadd.f32 %v1064_v18, %v1545_v47  ;;  %v737_v20 = vpop.f32.mrb[11].mxu1 }
 0x298   : > { %v776_v21 = vadd.f32 %v737_v20, %v1543_v44 }
 0x299   : > { %845 = vrot.lane.b32.xlu1 %v777_v19, %s1268_s11 }
 0x29a   : > { %839 = vrot.lane.b32.xlu0 %v776_v21, %s1269_s14 }
 0x29e   : > { %v1067_v23 = vpop.f32.mrb[12].mxu1 }
 0x29f   : > { %v779_v24 = vadd.f32 %v1067_v23, %v1549_v53  ;;  %v747_v25 = vpop.f32.mrb[13].mxu1 }
 0x2a0   : > { %v778_v26 = vadd.f32 %v747_v25, %v1547_v50 }
 0x2a1   : > { %857 = vrot.lane.b32.xlu1 %v779_v24, %s1270_s15 }
 0x2a2   : > { %851 = vrot.lane.b32.xlu0 %v778_v26, %s1271_s16 }
 0x2a6   : > { %v1070_v27 = vpop.f32.mrb[14].mxu1 }
 0x2a7   : > { %v781_v28 = vadd.f32 %v1070_v27, %v1553_v59  ;;  %v757_v29 = vpop.f32.mrb[15].mxu1 }
 0x2a8   : > { %v780_v30 = vadd.f32 %v757_v29, %v1551_v56 }
 0x2a9   : > { %869 = vrot.lane.b32.xlu1 %v781_v28, %s1272_s17 }
 0x2aa   : > { %863 = vrot.lane.b32.xlu0 %v780_v30, %s1273_s18 }
 0x2e3   : > { %v786_v31 = vpop.permute.xlu1 %785 }
 0x2e4   : > { %789 = vst.msk [vmem:[%s1561_s28] sm:$0xff] %vm788_vm1, %v786_v31 }
 0x2eb   : > { %v798_v33 = vpop.permute.xlu1 %797 }
 0x2ec   : > { %v792_v32 = vpop.permute.xlu0 %791 }
 0x2ed   : > { %795 = vst.msk [vmem:[%s1561_s28] sm:$0xff] %vm794_vm2, %v792_v32 }
 0x2ee   : > { %801 = vst.msk [vmem:[%s1561_s28] sm:$0xff] %vm800_vm3, %v798_v33 }
 0x2f3   : > { %v810_v35 = vpop.permute.xlu1 %809 }
 0x2f4   : > { %v804_v34 = vpop.permute.xlu0 %803 }
 0x2f5   : > { %807 = vst.msk [vmem:[%s1561_s28] sm:$0xff] %vm806_vm4, %v804_v34 }
 0x2f6   : > { %813 = vst.msk [vmem:[%s1561_s28] sm:$0xff] %vm812_vm5, %v810_v35 }
 0x2fb   : > { %v822_v37 = vpop.permute.xlu1 %821 }
 0x2fc   : > { %v816_v36 = vpop.permute.xlu0 %815 }
 0x2fd   : > { %819 = vst.msk [vmem:[%s1561_s28] sm:$0xff] %vm818_vm6, %v816_v36 }
 0x2fe   : > { %825 = vst.msk [vmem:[%s1561_s28] sm:$0xff] %vm824_vm7, %v822_v37 }
 0x303   : > { %v834_v39 = vpop.permute.xlu1 %833 }
 0x304   : > { %v828_v38 = vpop.permute.xlu0 %827 }
 0x305   : > { %831 = vst.msk [vmem:[%s1561_s28] sm:$0xff] %vm830_vm8, %v828_v38 }
 0x306   : > { %837 = vst.msk [vmem:[%s1561_s28] sm:$0xff] %vm836_vm9, %v834_v39 }
 0x30b   : > { %v846_v41 = vpop.permute.xlu1 %845 }
 0x30c   : > { %v840_v40 = vpop.permute.xlu0 %839 }
 0x30d   : > { %843 = vst.msk [vmem:[%s1561_s28] sm:$0xff] %vm842_vm10, %v840_v40 }
 0x30e   : > { %849 = vst.msk [vmem:[%s1561_s28] sm:$0xff] %vm848_vm11, %v846_v41 }
 0x313   : > { %v858_v43 = vpop.permute.xlu1 %857 }
 0x314   : > { %v852_v42 = vpop.permute.xlu0 %851 }
 0x315   : > { %855 = vst.msk [vmem:[%s1561_s28] sm:$0xff] %vm854_vm12, %v852_v42 }
 0x316   : > { %861 = vst.msk [vmem:[%s1561_s28] sm:$0xff] %vm860_vm13, %v858_v43 }
 0x31b   : > { %v870_v45 = vpop.permute.xlu1 %869 }
 0x31c   : > { %v864_v44 = vpop.permute.xlu0 %863 }
 0x31d   : > { %867 = vst.msk [vmem:[%s1561_s28] sm:$0xff] %vm866_vm14, %v864_v44 }
 0x31e   : > { %873 = vst.msk [vmem:[%s1561_s28] sm:$0xff] %vm872_vm15, %v870_v45 }
 0x31f PF: > { %s14_s12 = sadd.s32 1, %s1250_s12  }
 0x320   : > { %p11_p5 = scmp.ge.s32.totalorder %s14_s12, 4  }
 0x322   :  { %13 = sbr.rel (!%p11_p5) target bundleno = 1 (0x1), region = 67 }
 0x329   :  { %893 = vsyncpa [#allocation3], 1 }
 0x32a   :  { %895 = vsyncpa [#allocation3 + $0x1], 1 }

</bundles_post_ra>
